<compile_context>
chip_gen: v7x
topology: tpu7x:2x2x1
jax: 0.10.0
libtpu: 0.0.40
codegen_flags: <defaults>
</compile_context>

<pallas_src>
import jax
import jax.numpy as jnp
from jax.experimental import pallas as pl
from jax.experimental.pallas import tpu as pltpu


def _round_up(x, m):
    return (x + m - 1) // m * m


def _make_fused_kernel(num_inputs, c_per_input, slot_offsets, slot_sizes,
                       precision):
    """out = relu(W_fused @ concat_i(x_i) + bias); concat built in VMEM scratch."""

    def kernel(*refs):
        x_refs = refs[:num_inputs]                 # each (1, C_i, tm)
        w_ref = refs[num_inputs]                   # (Cout, Cin_pad), BN-scaled
        bias_ref = refs[num_inputs + 1]            # (Cout, 1), f32
        o_ref = refs[num_inputs + 2]               # (1, Cout, tm)
        xcat = refs[num_inputs + 3]                # scratch (Cin_pad, tm)

        tm = xcat.shape[1]
        for i in range(num_inputs):
            c, off, slot = c_per_input[i], slot_offsets[i], slot_sizes[i]
            xcat[off:off + c, :] = x_refs[i][0]
            pad = slot - c
            if pad:
                # Zero padding rows so stale VMEM (possibly NaN) cannot leak
                # through the zero-padded weight columns (NaN * 0 == NaN).
                xcat[off + c:off + slot, :] = jnp.zeros((pad, tm), xcat.dtype)

        acc = jnp.dot(w_ref[...], xcat[...],
                      preferred_element_type=jnp.float32, precision=precision)
        out = acc + bias_ref[...]                  # lane-broadcast bias add
        o_ref[0] = jnp.maximum(out, 0.0).astype(o_ref.dtype)

    return kernel


def _make_split_kernel(num_inputs, precision):
    """Per-input dots (used when every C_i is already MXU-wide and aligned)."""

    def kernel(*refs):
        x_refs = refs[:num_inputs]                 # each (1, C_i, tm)
        w_refs = refs[num_inputs:2 * num_inputs]   # each (Cout, C_i)
        bias_ref = refs[2 * num_inputs]            # (Cout, 1)
        o_ref = refs[2 * num_inputs + 1]           # (1, Cout, tm)

        acc = jnp.dot(w_refs[0][...], x_refs[0][0],
                      preferred_element_type=jnp.float32, precision=precision)
        for i in range(1, num_inputs):
            acc = acc + jnp.dot(w_refs[i][...], x_refs[i][0],
                                preferred_element_type=jnp.float32,
                                precision=precision)
        out = acc + bias_ref[...]
        o_ref[0] = jnp.maximum(out, 0.0).astype(o_ref.dtype)

    return kernel


def _pick_tile(n, hw, cin_pad, cout, x_itemsize, out_itemsize,
               vmem_budget=16 * 1024 * 1024):
    """Largest lane-dense (multiple of 128) spatial tile within the VMEM budget."""
    hw128 = _round_up(hw, 128)
    tm = 128
    for cand in (2048, 1024, 512, 256, 128):
        if cand > hw128:
            continue
        footprint = (2 * cin_pad * cand * x_itemsize      # double-buffered inputs
                     + 2 * cout * cand * out_itemsize     # double-buffered output
                     + cin_pad * cand * x_itemsize)       # concat scratch
        if footprint <= vmem_budget:
            tm = cand
            break
    # Keep a handful of grid steps so v7x's two TensorCores both get work and
    # the software pipeline fills; no effect at realistic N*HW sizes.
    while tm > 128 and n * ((hw + tm - 1) // tm) < 8:
        tm //= 2
    return tm


def root_forward(xs, weight, gamma, beta, running_mean, running_var,
                 eps=1e-5, precision=None, out_dtype=None):
    """Forward pass of Root: relu(bn(conv1x1(cat(xs, dim=1))))."""
    assert weight.shape[2] == 1 and weight.shape[3] == 1, "only 1x1 conv supported"

    num_inputs = len(xs)
    N, _, H, W = xs[0].shape
    c_per_input = [int(x.shape[1]) for x in xs]
    Cin = sum(c_per_input)
    Cout = int(weight.shape[0])
    HW = H * W

    x_dtype = xs[0].dtype
    out_dtype = x_dtype if out_dtype is None else out_dtype
    x_itemsize = jnp.dtype(x_dtype).itemsize
    out_itemsize = jnp.dtype(out_dtype).itemsize

    # ---- glue (plain JAX, layout-free / tiny) -------------------------------
    # Fold BN (inference stats) into the conv weight + a per-channel f32 bias.
    inv_std = 1.0 / jnp.sqrt(running_var.astype(jnp.float32) + eps)
    scale = gamma.astype(jnp.float32) * inv_std
    bias = (beta.astype(jnp.float32)
            - running_mean.astype(jnp.float32) * scale).reshape(Cout, 1)
    w2d = weight.reshape(Cout, Cin).astype(jnp.float32) * scale[:, None]

    # Sublane-packing alignment for the concat scratch (f32: 8, bf16: 16, i8: 32).
    slot_align = 8 * max(1, 4 // x_itemsize)
    slot_sizes = [_round_up(c, slot_align) for c in c_per_input]
    slot_offsets = []
    off = 0
    for s in slot_sizes:
        slot_offsets.append(off)
        off += s
    cin_pad = off

    use_split = all(c >= 128 and c % slot_align == 0 for c in c_per_input)

    # Free reshapes: NCHW -> (N, C, HW); keep the model-native dtype on the wire.
    x_flat = [x.reshape(N, c, HW) for x, c in zip(xs, c_per_input)]

    tm = _pick_tile(N, HW, cin_pad, Cout, x_itemsize, out_itemsize)
    grid = (N, pl.cdiv(HW, tm))

    in_specs = [pl.BlockSpec((1, c, tm), lambda n, m: (n, 0, m))
                for c in c_per_input]

    if use_split:
        w_args, o = [], 0
        for c in c_per_input:
            w_args.append(w2d[:, o:o + c].astype(x_dtype))
            o += c
        for c in c_per_input:
            in_specs.append(pl.BlockSpec((Cout, c), lambda n, m: (0, 0)))
        scratch_shapes = []
        kernel = _make_split_kernel(num_inputs, precision)
    else:
        # One fused weight: each input's columns live at its (aligned) slot;
        # padding columns are zero.
        w_fused = jnp.zeros((Cout, cin_pad), jnp.float32)
        o = 0
        for i, c in enumerate(c_per_input):
            w_fused = w_fused.at[:, slot_offsets[i]:slot_offsets[i] + c].set(
                w2d[:, o:o + c])
            o += c
        w_args = [w_fused.astype(x_dtype)]
        in_specs.append(pl.BlockSpec((Cout, cin_pad), lambda n, m: (0, 0)))
        scratch_shapes = [pltpu.VMEM((cin_pad, tm), x_dtype)]
        kernel = _make_fused_kernel(num_inputs, c_per_input, slot_offsets,
                                    slot_sizes, precision)

    in_specs.append(pl.BlockSpec((Cout, 1), lambda n, m: (0, 0)))   # bias (f32)
    out_specs = pl.BlockSpec((1, Cout, tm), lambda n, m: (n, 0, m))

    block_bytes = (2 * sum(c * tm * x_itemsize for c in c_per_input)
                   + 2 * Cout * tm * out_itemsize
                   + 2 * Cout * cin_pad * x_itemsize
                   + 2 * Cout * 4
                   + cin_pad * tm * x_itemsize)
    vmem_limit = min(64 * 1024 * 1024,
                     max(32 * 1024 * 1024, int(1.5 * block_bytes)))

    cost = pl.CostEstimate(
        flops=2 * N * HW * Cin * Cout,
        transcendentals=0,
        bytes_accessed=(sum(N * HW * c * x_itemsize for c in c_per_input)
                        + N * HW * Cout * out_itemsize
                        + Cout * cin_pad * x_itemsize + Cout * 4),
    )

    out_flat = pl.pallas_call(
        kernel,
        out_shape=jax.ShapeDtypeStruct((N, Cout, HW), out_dtype),
        grid_spec=pltpu.PrefetchScalarGridSpec(
            num_scalar_prefetch=0,
            grid=grid,
            in_specs=in_specs,
            out_specs=out_specs,
            scratch_shapes=scratch_shapes,
        ),
        compiler_params=pltpu.CompilerParams(
            dimension_semantics=("parallel", "parallel"),
            vmem_limit_bytes=vmem_limit),
        cost_estimate=cost,
    )(*x_flat, *w_args, bias)

    return out_flat.reshape(N, Cout, H, W)                  # free reshape


def _reference(xs, weight, gamma, beta, running_mean, running_var, eps=1e-5):
    x = jnp.concatenate([v.astype(jnp.float32) for v in xs], axis=1)
    y = jnp.einsum('nchw,oc->nohw', x, weight.reshape(weight.shape[0], -1))
    inv = 1.0 / jnp.sqrt(running_var + eps)
    y = (y - running_mean[None, :, None, None]) * inv[None, :, None, None]
    y = y * gamma[None, :, None, None] + beta[None, :, None, None]
    return jnp.maximum(y, 0.0)


if __name__ == "__main__":
    key = jax.random.PRNGKey(0)
    k1, k2, k3, k4, k5, k6, k7 = jax.random.split(key, 7)

    # Small shapes: two NCHW inputs concatenated on channels (DLA Root pattern).
    N, C1, C2, H, W = 2, 4, 4, 16, 16
    Cin, Cout, ksize = C1 + C2, 16, 1

    x0 = jax.random.normal(k1, (N, C1, H, W), dtype=jnp.float32)
    x1 = jax.random.normal(k2, (N, C2, H, W), dtype=jnp.float32)

    # Deterministic parameter init (shapes follow nn.Conv2d / nn.BatchNorm2d).
    weight = jax.random.normal(k3, (Cout, Cin, ksize, ksize), dtype=jnp.float32) * 0.1
    gamma = 1.0 + 0.1 * jax.random.normal(k4, (Cout,), dtype=jnp.float32)
    beta = 0.1 * jax.random.normal(k5, (Cout,), dtype=jnp.float32)
    running_mean = 0.1 * jax.random.normal(k6, (Cout,), dtype=jnp.float32)
    running_var = jnp.abs(1.0 + 0.1 * jax.random.normal(k7, (Cout,), dtype=jnp.float32))

    # float32 path (fused single-dot kernel) vs reference.
    out = root_forward([x0, x1], weight, gamma, beta, running_mean, running_var)
    out = jax.block_until_ready(out)
    ref = _reference([x0, x1], weight, gamma, beta, running_mean, running_var)
    assert out.shape == (N, Cout, H, W), out.shape
    assert out.dtype == jnp.float32, out.dtype
    err = float(jnp.max(jnp.abs(out - ref)))
    assert jnp.allclose(out, ref, atol=1e-4, rtol=1e-4), err

    # bfloat16 path smoke test (model-native dtype; channels aligned to bf16
    # sublane packing so the fused concat uses full-tile stores).
    C1b = C2b = 16
    xb0 = jax.random.normal(k1, (N, C1b, H, W), dtype=jnp.float32)
    xb1 = jax.random.normal(k2, (N, C2b, H, W), dtype=jnp.float32)
    wb = jax.random.normal(k3, (Cout, C1b + C2b, 1, 1), dtype=jnp.float32) * 0.1
    xb0h = xb0.astype(jnp.bfloat16)
    xb1h = xb1.astype(jnp.bfloat16)
    out_h = root_forward([xb0h, xb1h], wb, gamma, beta, running_mean, running_var)
    out_h = jax.block_until_ready(out_h)
    ref_h = _reference([xb0h, xb1h], wb, gamma, beta, running_mean, running_var)
    assert out_h.dtype == jnp.bfloat16, out_h.dtype
    err_h = float(jnp.max(jnp.abs(out_h.astype(jnp.float32) - ref_h)))
    assert err_h < 1e-1, err_h

    print("KERNEL_OK")
</pallas_src>

<mosaic_0001>
module attributes {stable_mosaic.version = 11 : i64} {
  func.func @kernel(%arg0: i32, %arg1: i32, %arg2: memref<1x4x128xf32, #tpu.memory_space<vmem>>, %arg3: memref<1x4x128xf32, #tpu.memory_space<vmem>>, %arg4: memref<16x16xf32, #tpu.memory_space<vmem>>, %arg5: memref<16x1xf32, #tpu.memory_space<vmem>>, %arg6: memref<1x16x128xf32, #tpu.memory_space<vmem>>, %arg7: memref<16x128xf32, #tpu.memory_space<vmem>>) attributes {dimension_semantics = [#tpu.dimension_semantics<parallel>, #tpu.dimension_semantics<parallel>], iteration_bounds = array<i64: 2, 2>, scalar_prefetch = 0 : i64, scratch_operands = 1 : i64, tpu.core_type = #tpu.core_type<tc>, window_params = [{transform_indices = @transform_0, window_bounds = array<i64: 1, 4, 128>}, {transform_indices = @transform_1, window_bounds = array<i64: 1, 4, 128>}, {pipeline_mode = #tpu.pipeline_mode<synchronous>, transform_indices = @transform_2, window_bounds = array<i64: 16, 16>}, {pipeline_mode = #tpu.pipeline_mode<synchronous>, transform_indices = @transform_3, window_bounds = array<i64: 16, 1>}, {transform_indices = @transform_4, window_bounds = array<i64: 1, 16, 128>}]} {
    %c0 = arith.constant 0 : index
    %c0_0 = arith.constant 0 : index
    %c0_1 = arith.constant 0 : index
    %0 = vector.load %arg2[%c0, %c0_0, %c0_1] : memref<1x4x128xf32, #tpu.memory_space<vmem>>, vector<1x4x128xf32>
    %1 = vector.shape_cast %0 : vector<1x4x128xf32> to vector<4x128xf32>
    %c0_2 = arith.constant 0 : index
    %c0_3 = arith.constant 0 : index
    %2 = vector.load %arg7[%c0_2, %c0_3] : memref<16x128xf32, #tpu.memory_space<vmem>>, vector<4x128xf32>
    tpu.vector_store %arg7[%c0_2, %c0_3], %1 {strides = array<i32>} : memref<16x128xf32, #tpu.memory_space<vmem>>, vector<4x128xf32>,
    %cst = arith.constant 0.000000e+00 : f32
    %3 = vector.broadcast %cst : f32 to vector<4x128xf32>
    %c4 = arith.constant 4 : index
    %c0_4 = arith.constant 0 : index
    %4 = vector.load %arg7[%c4, %c0_4] : memref<16x128xf32, #tpu.memory_space<vmem>>, vector<4x128xf32>
    tpu.vector_store %arg7[%c4, %c0_4], %3 {strides = array<i32>} : memref<16x128xf32, #tpu.memory_space<vmem>>, vector<4x128xf32>,
    %c0_5 = arith.constant 0 : index
    %c0_6 = arith.constant 0 : index
    %c0_7 = arith.constant 0 : index
    %5 = vector.load %arg3[%c0_5, %c0_6, %c0_7] : memref<1x4x128xf32, #tpu.memory_space<vmem>>, vector<1x4x128xf32>
    %6 = vector.shape_cast %5 : vector<1x4x128xf32> to vector<4x128xf32>
    %c8 = arith.constant 8 : index
    %c0_8 = arith.constant 0 : index
    %7 = vector.load %arg7[%c8, %c0_8] : memref<16x128xf32, #tpu.memory_space<vmem>>, vector<4x128xf32>
    tpu.vector_store %arg7[%c8, %c0_8], %6 {strides = array<i32>} : memref<16x128xf32, #tpu.memory_space<vmem>>, vector<4x128xf32>,
    %cst_9 = arith.constant 0.000000e+00 : f32
    %8 = vector.broadcast %cst_9 : f32 to vector<4x128xf32>
    %c12 = arith.constant 12 : index
    %c0_10 = arith.constant 0 : index
    %9 = vector.load %arg7[%c12, %c0_10] : memref<16x128xf32, #tpu.memory_space<vmem>>, vector<4x128xf32>
    tpu.vector_store %arg7[%c12, %c0_10], %8 {strides = array<i32>} : memref<16x128xf32, #tpu.memory_space<vmem>>, vector<4x128xf32>,
    %c0_11 = arith.constant 0 : index
    %c0_12 = arith.constant 0 : index
    %10 = vector.load %arg4[%c0_11, %c0_12] : memref<16x16xf32, #tpu.memory_space<vmem>>, vector<16x16xf32>
    %c0_13 = arith.constant 0 : index
    %c0_14 = arith.constant 0 : index
    %11 = vector.load %arg7[%c0_13, %c0_14] : memref<16x128xf32, #tpu.memory_space<vmem>>, vector<16x128xf32>
    %cst_15 = arith.constant dense<0.000000e+00> : vector<16x128xf32>
    %12 = tpu.matmul %10, %11, %cst_15 {dimension_numbers = #tpu.dot_dimension_numbers<[1], [0], [0], [1], [0, 0, 1, 1], [], []>} : vector<16x16xf32>, vector<16x128xf32>, vector<16x128xf32> -> vector<16x128xf32>
    %c0_16 = arith.constant 0 : index
    %c0_17 = arith.constant 0 : index
    %13 = vector.load %arg5[%c0_16, %c0_17] : memref<16x1xf32, #tpu.memory_space<vmem>>, vector<16x1xf32>
    %14 = vector.broadcast %13 : vector<16x1xf32> to vector<16x128xf32>
    %15 = arith.addf %12, %14 : vector<16x128xf32>
    %cst_18 = arith.constant 0.000000e+00 : f32
    %16 = vector.broadcast %cst_18 : f32 to vector<16x128xf32>
    %17 = arith.maximumf %15, %16 : vector<16x128xf32>
    %c0_19 = arith.constant 0 : index
    %c0_20 = arith.constant 0 : index
    %c0_21 = arith.constant 0 : index
    %18 = vector.load %arg6[%c0_19, %c0_20, %c0_21] : memref<1x16x128xf32, #tpu.memory_space<vmem>>, vector<1x16x128xf32>
    %19 = vector.shape_cast %18 : vector<1x16x128xf32> to vector<16x128xf32>
    %20 = vector.shape_cast %17 : vector<16x128xf32> to vector<1x16x128xf32>
    tpu.vector_store %arg6[%c0_19, %c0_20, %c0_21], %20 {strides = array<i32>} : memref<1x16x128xf32, #tpu.memory_space<vmem>>, vector<1x16x128xf32>,
    return
  }
  func.func @transform_0(%arg0: i32, %arg1: i32) -> (i32, i32, i32) {
    %c0_i32 = arith.constant 0 : i32
    %c0_i32_0 = arith.constant 0 : i32
    return %arg0, %c0_i32, %arg1 : i32, i32, i32
  }
  func.func @transform_1(%arg0: i32, %arg1: i32) -> (i32, i32, i32) {
    %c0_i32 = arith.constant 0 : i32
    %c0_i32_0 = arith.constant 0 : i32
    return %arg0, %c0_i32, %arg1 : i32, i32, i32
  }
  func.func @transform_2(%arg0: i32, %arg1: i32) -> (i32, i32) {
    %c0_i32 = arith.constant 0 : i32
    %c0_i32_0 = arith.constant 0 : i32
    %c0_i32_1 = arith.constant 0 : i32
    return %c0_i32, %c0_i32_0 : i32, i32
  }
  func.func @transform_3(%arg0: i32, %arg1: i32) -> (i32, i32) {
    %c0_i32 = arith.constant 0 : i32
    %c0_i32_0 = arith.constant 0 : i32
    %c0_i32_1 = arith.constant 0 : i32
    return %c0_i32, %c0_i32_0 : i32, i32
  }
  func.func @transform_4(%arg0: i32, %arg1: i32) -> (i32, i32, i32) {
    %c0_i32 = arith.constant 0 : i32
    %c0_i32_0 = arith.constant 0 : i32
    return %arg0, %c0_i32, %arg1 : i32, i32, i32
  }
}

</mosaic_0001>

<bundles_post_ra>
// kernel: tpu_custom_call.1
= control target key start
LH: loop header
LB: loop body
LE: loop exit
PB: predicated region body
PF: predicated region fallthrough
CT: control target
= control target key end

     0   :  { %s1102_s0 = inlined_call_operand.vmem [shape: f32[2,4,256], index: 0, kind: input, shape index: {}]   ;;  %s1103_s1 = inlined_call_operand.hbm [shape: f32[2,4,256], index: 1, kind: input, shape index: {}]   ;;  %s1104_s2 = inlined_call_operand.hbm [shape: f32[16,16], index: 2, kind: input, shape index: {}]   ;;  %s1105_s3 = inlined_call_operand.vmem [shape: f32[16,1], index: 3, kind: input, shape index: {}]   ;;  %s1106_s4 = inlined_call_operand.hbm [shape: f32[2,16,256], index: 4, kind: output, shape index: {}]  }
   0x1   :  { %1115 = sst [smem:[#allocation15_spill]] %s1104_s2 }
   0x2   :  { %1116 = sst [smem:[#allocation16_spill]] %s1106_s4 }
   0x3   :  { %9 = vsyncpa [#allocation4], 0 }
   0x4   :  { %11 = vsyncpa [#allocation4 + $0x1], 0 }
   0x5   :  { %12 = vsyncpa [#allocation7], 0 }
   0x6   :  { %13 = vsyncpa [#allocation5], 0 }
   0x7   :  { %15 = vsyncpa [#allocation5 + $0x1], 0  ;;  %s846_s15 = smov 0   ;;  %s848_s16 = smov 0  }
   0x8   :  { %s850_s17 = smov 0   ;;  %s852_s18 = smov 0  }
   0x9   :  { %s854_s19 = smov 0   ;;  %s856_s20 = smov 0  }
   0xa   :  { %s858_s21 = smov 0   ;;  %s860_s22 = smov 0  }
   0xb LB: > { %1117 = sst [smem:[#allocation12_spill]] %s781_s15  ;;  %s516_s23 = sadd.s32 4294967295, %s809_s22   ;;  %s809_s22 = sphi %s860_s22, %s21_s22   ;;  %s805_s21 = sphi %s858_s21, %s1146_s21   ;;  %s801_s20 = sphi %s856_s20, %s1145_s20   ;;  %s797_s19 = sphi %s854_s19, %s1144_s19   ;;  %s793_s18 = sphi %s852_s18, %s1143_s18   ;;  %s789_s17 = sphi %s850_s17, %s1142_s17   ;;  %s785_s16 = sphi %s848_s16, %s1141_s16   ;;  %s781_s15 = sphi %s846_s15, %s1140_s15  }
   0xc   : > { %s517_s24 = sadd.s32 4294967294, %s809_s22   ;;  %p83_p0 = scmp.ne.s32.totalorder %s785_s16, %s781_s15 }
   0xd   : > { %p890_p1 = scmp.eq.s32.totalorder %s516_s23, 0  ;;  %p894_p2 = scmp.eq.s32.totalorder %s516_s23, 3 }
   0xe   : > { %p157_p3 = scmp.eq.s32.totalorder %s517_s24, 3  ;;  %p518_p5 = scmp.ge.s32.totalorder %s809_s22, 1 }
   0xf   : > { %s1118_s25 = scalar_select %p890_p1, 1, 0 }
  0x10   : > { %s1119_s26 = scalar_select %p894_p2, 1, 0 }
  0x11   : > { %p900_p4 = por %p890_p1, %p83_p0  ;;  %p905_p6 = por %p157_p3, %p83_p0 }
  0x12   : > { %p164_p7 = scmp.lt.s32.totalorder %s809_s22, 5  ;;  %s811_s30 = smov [#allocation6]  }
  0x13   : > { %s1120_s27 = scalar_select %p900_p4, 1, 0 }
  0x14   : > { %s1121_s28 = scalar_select %p905_p6, 1, 0 }
  0x15   : > { %p910_p8 = pnand %p518_p5, %p164_p7  ;;  %s176_s5 = sshll.u32 %s811_s30, 4  ;;  %s177_s5 = int_to_ptr.vmem [resolvable:$true] %s176_s5 }
  0x16   : > { %1122 = sst [smem:[#allocation13_spill]] %s1121_s28  ;;  %s1125_s2 = sld [smem:[#allocation15_spill]] }
  0x17   : > { %s1123_s29 = scalar_select %p910_p8, 1, 0 }
  0x18   : > { %p560_p9 = pneg %p910_p8 }
  0x1a   : > { %p918_p10 = pnand %p560_p9, %p890_p1 }
  0x1c   : > { %s649_s9 = scalar_lea.hbm %s1125_s2, 256  ;;  %p651_p12 = pneg %p918_p10 }
  0x1d   : > { %p650_p11 = scmp.ne.s32.totalorder %s1125_s2, %s649_s9  ;;  %p656_p3 = scmp.lt.u32.totalorder %s649_s9, %s1125_s2 }
  0x1f   : > { %p652_p13 = pnand %p651_p12, %p650_p11 }
  0x21   : > { %p653_p0 = pneg %p652_p13 }
  0x23   : > { %p658_p5 = pnand %p656_p3, %p653_p0 }
  0x25   : > { %661 = shalt.err (!%p658_p5)
}
  0x26   : > { %s662_s14 = scalar_lea.vmem %s177_s5, 256  ;;  %p670_p1 = scmp.lt.s32.totalorder %s177_s5, %s177_s5 }
  0x27   : > { %p663_p7 = scmp.ne.s32.totalorder %s177_s5, %s662_s14  ;;  %p671_p4 = scmp.lt.s32.totalorder %s662_s14, %s662_s14 }
  0x29   : > { %p665_p9 = pnand %p663_p7, %p651_p12  ;;  %p672_p8 = por %p671_p4, %p670_p1 }
  0x2b   : > { %p666_p6 = pneg %p665_p9 }
  0x2d   : > { %p673_p2 = pnand %p672_p8, %p666_p6 }
  0x2f   : > { %676 = shalt.err (!%p673_p2)
}
  0x30   : > { %s812_s23 = smov 128   ;;  %s813_s24 = smov 8  }
  0x31   : > { %563 = dma.hbm_to_vmem [thread:$0]  (!%p918_p10), %s1125_s2, 256, %s177_s5, [#allocation7], %s812_s23, %s812_s23, %s813_s24  }
  0x32   : > { %s30_s8 = sadd.s32 1, %s801_s20  ;;  %s33_s9 = sadd.s32 1, %s805_s21 }
  0x33   : > { %p31_p1 = scmp.ge.s32.totalorder %s30_s8, 2  ;;  %s70_s10 = sadd.s32 1, %s789_s17 }
  0x34   : > { %p77_p2 = scmp.ne.s32.totalorder %s789_s17, %s785_s16  ;;  %p78_p4 = scmp.eq.s32.totalorder %s809_s22, 0 }
  0x35   : > { %s1148_s8 = smov (%p31_p1, %s30_s8), 0  ;;  %s1150_s9 = smov (!%p31_p1, %s33_s9), %s805_s21 }
  0x36   : > { %1126 = sst [smem:[#allocation14_spill]] %s1148_s8  ;;  %s66_s11 = ssub.s32 %s801_s20, %s1148_s8 }
  0x37   : > { %p35_p6 = scmp.ge.s32.totalorder %s1150_s9, 2  ;;  %p1127_p8 = scmp.ne.s32.totalorder %s1119_s26, 0 }
  0x38   : > { %p955_p10 = por %p78_p4, %p77_p2  ;;  %p573_p12 = scmp.lt.s32.totalorder %s809_s22, 4 }
  0x39   : > { %p951_p11 = por %p1127_p8, %p77_p2  ;;  %s1152_s9 = smov (%p35_p6, %s1150_s9), 0 }
  0x3a   : > { %s204_s12 = sand.u32 1, %s789_s17   ;;  %s522_s13 = sshll.u32 %s805_s21, 1 }
  0x3b   : > { %s65_s14 = ssub.s32 %s805_s21, %s1152_s9  ;;  %s521_s24 = sshll.u32 %s204_s12, 2 }
  0x3c   : > { %s67_s23 = sor.u32 %s66_s11, %s65_s14  ;;  %s213_s26 = sadd.s32 %s801_s20, %s522_s13 }
  0x3d   : > { %p68_p13 = scmp.eq.s32.totalorder %s67_s23, 0  ;;  %s208_s30 = scalar_lea.vmem [#allocation3], %s521_s24 }
  0x3e   : > { %s217_s7 = sshll.u32 %s208_s30, 4  ;;  %s523_s8 = sshll.u32 %s213_s26, 6  ;;  %s970_s7 = int_to_ptr.vmem [resolvable:$true] %s217_s7 }
  0x3f   : > { %s968_s2 = scalar_select %p68_p13, %s789_s17, %s70_s10  }
  0x40   : > { %s975_s4 = scalar_lea.hbm %s1103_s1, %s523_s8  ;;  %p981_p0 = pnand %p573_p12, %p955_p10 }
  0x41   : > { %s205_s10 = scalar_lea.sflag [#allocation4], %s204_s12  ;;  %s677_s13 = scalar_lea.hbm %s975_s4, 64 }
  0x42   : > { %p678_p3 = scmp.ne.s32.totalorder %s975_s4, %s677_s13  ;;  %p679_p5 = pneg %p981_p0 }
  0x43   : > { %s682_s8 = scalar_lea.hbm %s1103_s1, 256  ;;  %p683_p1 = scmp.lt.u32.totalorder %s975_s4, %s1103_s1 }
  0x44   : > { %p680_p7 = pnand %p679_p5, %p678_p3  ;;  %p684_p2 = scmp.lt.u32.totalorder %s682_s8, %s677_s13 }
  0x45   : > { %p686_p6 = scmp.lt.u32.totalorder %s677_s13, %s975_s4 }
  0x46   : > { %p681_p9 = pneg %p680_p7  ;;  %p685_p4 = por %p684_p2, %p683_p1 }
  0x48   : > { %p687_p8 = por %p686_p6, %p685_p4 }
  0x4a   : > { %p688_p10 = pnand %p687_p8, %p681_p9 }
  0x4c   : > { %691 = shalt.err (!%p688_p10)
}
  0x4d   : > { %s692_s12 = scalar_lea.vmem %s970_s7, 64  ;;  %s814_s23 = smov [#allocation3]  }
  0x4e   : > { %p693_p12 = scmp.ne.s32.totalorder %s970_s7, %s692_s12  ;;  %s697_s24 = sshll.u32 %s814_s23, 4  ;;  %s698_s24 = int_to_ptr.vmem [resolvable:$false] %s697_s24 }
  0x4f   : > { %s699_s26 = scalar_lea.vmem %s698_s24, 128  ;;  %p700_p7 = scmp.lt.s32.totalorder %s970_s7, %s698_s24 }
  0x50   : > { %p695_p13 = pnand %p693_p12, %p679_p5  ;;  %p701_p1 = scmp.lt.s32.totalorder %s699_s26, %s692_s12 }
  0x52   : > { %p696_p3 = pneg %p695_p13  ;;  %p702_p2 = por %p701_p1, %p700_p7 }
  0x54   : > { %p703_p4 = pnand %p702_p2, %p696_p3 }
  0x56   : > { %706 = shalt.err (!%p703_p4)
}
  0x57   : > { %567 = dma.hbm_to_vmem [thread:$0]  (!%p981_p0), %s975_s4, 64, %s970_s7, %s205_s10  }
  0x58   : > { %p1131_p9 = scmp.ne.s32.totalorder %s1123_s29, 0 }
  0x59   : > { %s1013_s30 = sand.u32 (!%p1131_p9), 1, %s785_s16   ;;  %p1132_p5 = scmp.ne.s32.totalorder (!%p1131_p9), %s1120_s27, 0 }
  0x5a   : > { %226 = sbr.rel (%p1131_p9) target bundleno = 357 (0x165), region = 36  ;;  %s525_s13 = sshll.u32 (!%p1131_p9), %s1013_s30, 2 }
  0x5b   : > { %s229_s15 = scalar_lea.sflag (!%p1131_p9), [#allocation4], %s1013_s30  ;;  %s232_s28 = scalar_lea.vmem (!%p1131_p9), [#allocation3], %s525_s13 }
  0x61   : > { %768 = dma.done.wait (%p1132_p5), %s229_s15, 64  }
  0x62   : > { %770 = vsyncadd (%p1132_p5), %s229_s15, 4294967232  ;;  %p1133_p6 = scmp.ne.s32.totalorder %s1118_s25, 0 }
  0x64   : > { %772 = dma.done.wait (%p1133_p6), [#allocation7], 256  }
  0x65   : > { %774 = vsyncadd (%p1133_p6), [#allocation7], 4294967040  ;;  %p269_p0 = scmp.lt.s32.totalorder %s797_s19, 1  ;;  %p271_p8 = scmp.lt.s32.totalorder %s793_s18, 1  ;;  %v815_v0 = vmov 0.0   ;;  %v816_v1 = vmov 0  }
  0x66   : > { %279 = vst [vmem:[#allocation2 + $0x4] sm:$0xf] %v815_v0  ;;  %282 = vst [vmem:[#allocation2 + $0xc] sm:$0xf] %v815_v0  ;;  %648 = vset.pattern.permute.xlu0 %v816_v1  ;;  %vm299_vm0 = vcmask 130048   ;;  %v283_v3 = vld [vmem:[#allocation6] sm:$0xff] }
  0x67   : > { %s270_s4 = scalar_select %p269_p0, %s797_s19, 1  ;;  %v280_v2 = vld [vmem:[%s232_s28] sm:$0xf]  ;;  %545 = vmatprep.mubr.msk.f32.mxu0 %vm299_vm0, %v283_v3  ;;  %v287_v5 = vld [vmem:[%s1105_s3] sm:$0xff]  ;;  %v288_v6 = vld [vmem:[%s1105_s3 + $0x8] sm:$0xff] }
  0x68   : > { %s272_s27 = scalar_select %p271_p8, %s793_s18, 1  ;;  %281 = vst [vmem:[#allocation2 + $0x8] sm:$0xf] %v280_v2  ;;  %291 = vperm.xlu0 %648, %v287_v5   ;;  %v284_v10 = vld [vmem:[#allocation6 + $0x8] sm:$0xff] }
  0x69   : > { %s528_s29 = sshll.u32 %s270_s4, 1  ;;  %s527_s24 = sshll.u32 %s1013_s30, 4 }
  0x6a   : > { %s274_s7 = sadd.s32 %s528_s29, %s272_s27  ;;  %s533_s26 = sshll.u32 %s797_s19, 2 }
  0x6b   : > { %s529_s11 = sshll.u32 %s274_s7, 2  ;;  %s397_s13 = sadd.s32 %s793_s18, %s533_s26 }
  0x6c   : > { %s276_s8 = scalar_lea.vmem %s1102_s0, %s529_s11  ;;  %296 = vperm.xlu0 %648, %v288_v6   ;;  %s268_s15 = scalar_lea.vmem [#allocation8], %s527_s24 }
  0x6d   : > { %v277_v4 = vld [vmem:[%s276_s8] sm:$0xf]  ;;  %s400_s28 = sshll.u32 %s268_s15, 4  ;;  %s534_s4 = sshll.u32 %s397_s13, 7  ;;  %s1043_s28 = int_to_ptr.vmem [resolvable:$true] %s400_s28 }
  0x6e   : > { %278 = vst [vmem:[#allocation2] sm:$0xf] %v277_v4  ;;  %s1134_s19 = sld [smem:[#allocation16_spill]]  ;;  %s386_s18 = scalar_lea.sflag [#allocation5], %s1013_s30 }
  0x6f   : > { %v286_v7 = vld [vmem:[#allocation2 + $0x8] sm:$0xff]  ;;  %s707_s10 = scalar_lea.vmem %s1043_s28, 256  ;;  %s817_s25 = smov [#allocation8]  }
  0x70   : > { %p708_p10 = scmp.ne.s32.totalorder %s1043_s28, %s707_s10  ;;  %s711_s8 = sshll.u32 %s817_s25, 4  ;;  %s712_s8 = int_to_ptr.vmem [resolvable:$false] %s711_s8 }
  0x71   : > { %s713_s5 = scalar_lea.vmem %s712_s8, 512  ;;  %p714_p3 = scmp.lt.s32.totalorder %s1043_s28, %s712_s8 }
  0x72   : > { %p709_p12 = pnand %p708_p10, %p951_p11  ;;  %p715_p7 = scmp.lt.s32.totalorder %s713_s5, %s707_s10 }
  0x74   : > { %s1135_s7 = smov %s1134_s19  ;;  %s1048_s11 = scalar_lea.hbm %s1134_s19, %s534_s4 }
  0x75   : > { %v285_v8 = vld [vmem:[#allocation2] sm:$0xff]  ;;  %p710_p13 = pneg %p709_p12  ;;  %p716_p1 = por %p715_p7, %p714_p3 }
  0x76   : > { %v548_v9 = vpack.c.bf16 %v286_v7, %v285_v8 }
  0x77   : > { %p717_p2 = pnand %p716_p1, %p710_p13 }
  0x78   : > { %549 = vmatprep.subr.bf16.mxu0 %v548_v9 }
  0x79   : > { %551 = vmatpush3.bf16.msra.mxu0 %v548_v9 }
  0x7c   : > { %546 = vmatmul.mubr.msk.f32.vlgmr.msra.gmra.mrb[0].mxu0 %vm299_vm0, %v284_v10 }
  0xe7   : > { %v292_v11 = vpop.permute.xlu0 %291 }
  0xeb   : > { %v297_v12 = vpop.permute.xlu0 %296 }
 0x14f   : > { %v547_v13 = vpop.f32.mrb[0].mxu0 }
 0x150   : > { %v378_v14 = vadd.f32 %v547_v13, %v297_v12  ;;  %v372_v15 = vpop.f32.mrb[1].mxu0 }
 0x151   : > { %v373_v16 = vadd.f32 %v372_v15, %v292_v11 }
 0x152   : > { %v382_v17 = vmax.f32 %v378_v14, 0.0 }
 0x153   : > { %v381_v18 = vmax.f32 %v373_v16, 0.0 }
 0x154   : > { %384 = vst [vmem:[%s268_s15 + $0x8] sm:$0xff] %v382_v17 }
 0x155   : > { %383 = vst [vmem:[%s268_s15] sm:$0xff] %v381_v18 }
 0x156   : > { %720 = shalt.err (!%p717_p2)
}
 0x157   : > { %s721_s14 = scalar_lea.hbm %s1048_s11, 256  ;;  %s725_s24 = scalar_lea.hbm %s1135_s7, 1024 }
 0x158   : > { %p722_p4 = scmp.ne.s32.totalorder %s1048_s11, %s721_s14  ;;  %p726_p6 = scmp.lt.u32.totalorder %s1048_s11, %s1135_s7 }
 0x159   : > { %p727_p0 = scmp.lt.u32.totalorder %s725_s24, %s721_s14  ;;  %p729_p10 = scmp.lt.u32.totalorder %s721_s14, %s1048_s11 }
 0x15a   : > { %p723_p9 = pnand %p722_p4, %p951_p11 }
 0x15b   : > { %p728_p8 = por %p727_p0, %p726_p6 }
 0x15c   : > { %p724_p5 = pneg %p723_p9 }
 0x15d   : > { %p730_p12 = por %p729_p10, %p728_p8 }
 0x15f   : > { %p731_p13 = pnand %p730_p12, %p724_p5 }
 0x161   : > { %734 = shalt.err (!%p731_p13)
}
 0x162   : > { %s818_s15 = smov 128   ;;  %s819_s4 = smov 256  }
 0x163   : > { %s820_s27 = smov 8  }
 0x164   : > { %558 = dma.vmem_to_hbm [thread:$0]  (%p951_p11), %s1043_s28, 256, %s1048_s11, %s386_s18, %s818_s15, %s819_s4, %s820_s27  }
 0x165 PF: > { %s1136_s29 = sld [smem:[#allocation12_spill]]  ;;  %s1137_s19 = sld [smem:[#allocation13_spill]] }
 0x166   : > { %p575_p3 = scmp.ge.s32.totalorder %s809_s22, 2 }
 0x16b   : > { %s415_s10 = sand.u32 1, %s1136_s29   ;;  %p1138_p7 = scmp.ne.s32.totalorder %s1137_s19, 0 }
 0x16c   : > { %s416_s25 = scalar_lea.sflag [#allocation5], %s415_s10 }
 0x16d   : > { %p569_p1 = pnand %p575_p3, %p1138_p7 }
 0x16f   : > { %776 = dma.done.wait (!%p569_p1), %s416_s25, 256  }
 0x170   : > { %778 = vsyncadd (!%p569_p1), %s416_s25, 4294967040  ;;  %s21_s22 = sadd.s32 1, %s809_s22   ;;  %s1139_s6 = sld [smem:[#allocation14_spill]] }
 0x171   : > { %p18_p2 = scmp.ge.s32.totalorder %s21_s22, 6   ;;  %s1140_s15 = smov %s785_s16 }
 0x172   : > { %s1141_s16 = smov %s789_s17  ;;  %s1142_s17 = smov %s968_s2 }
 0x173   : > { %s1143_s18 = smov %s801_s20  ;;  %s1144_s19 = smov %s805_s21 }
 0x174   : > { %s1146_s21 = smov %s1152_s9  ;;  %20 = sbr.rel (!%p18_p2) target bundleno = 11 (0xb), region = 88 }
 0x176   : > { %s1145_s20 = smov %s1139_s6 }
 0x17b   :  { %421 = vsyncpa [#allocation4], 1 }
 0x17c   :  { %423 = vsyncpa [#allocation4 + $0x1], 1 }
 0x17d   :  { %424 = vsyncpa [#allocation7], 1 }
 0x17e   :  { %425 = vsyncpa [#allocation5], 1 }
 0x17f   :  { %427 = vsyncpa [#allocation5 + $0x1], 1 }

</bundles_post_ra>
